<compile_context>
chip_gen: v7x
topology: tpu7x:2x2x1
jax: 0.10.0
libtpu: 0.0.40
codegen_flags: <defaults>
</compile_context>

<pallas_src>
import jax
import jax.numpy as jnp
from jax.experimental import pallas as pl
from jax.experimental.pallas import tpu as pltpu


def _round_up(x, m):
    return (x + m - 1) // m * m


def _tpu_vmem_and_cores():
    """Per-core VMEM bytes and an inferred TensorCore-per-chip count.

    Falls back to the most conservative assumption (64 MiB VMEM, 2 cores) if the
    query is unavailable; that keeps tiling safe on any generation.
    """
    vmem = 64 * 1024 * 1024
    try:
        info = pltpu.get_tpu_info()
        for attr in ("vmem_capacity_bytes", "vmem_bytes", "vmem_size_bytes"):
            v = getattr(info, attr, None)
            if v:
                vmem = int(v)
                break
    except Exception:
        pass
    # Only the 64-MiB-per-TC generation (v7x-class) has 2 TensorCores per chip.
    cores = 2 if vmem <= 64 * 1024 * 1024 else 1
    return vmem, cores


def _make_featurizer_kernel(t_valid_last, needs_mask):
    """Build the kernel; t_valid_last = valid rows in the last T block (static)."""

    def kernel(nw_ref, x_ref, o_ref):
        # nw_ref: (L, 1)   f32  softmax(weights) / T (time-mean folded in)
        # x_ref:  (L, tT, tH)   native-dtype streamed tile of the SSL embeddings
        # o_ref:  (1, tH)  f32  resident accumulator / output block
        t_idx = pl.program_id(1)

        # Init the resident output block on the first step of the T (reduction) axis.
        @pl.when(t_idx == 0)
        def _():
            o_ref[...] = jnp.zeros_like(o_ref)

        def accumulate(x):
            # Fuse the widening cast into the time reduction (no f32 tile copy).
            x_tsum = jnp.sum(x, axis=1, dtype=jnp.float32)               # (L, tH)
            # VPU broadcast weighted sum over layers (avoids an M=1 MXU matmul).
            o_ref[...] += jnp.sum(nw_ref[...] * x_tsum, axis=0, keepdims=True)

        if needs_mask:
            last = pl.num_programs(1) - 1

            @pl.when(t_idx != last)
            def _():
                accumulate(x_ref[...])

            @pl.when(t_idx == last)
            def _():
                # Edge T block: Pallas does not guarantee zeros in the out-of-bounds
                # rows of the DMA'd tile, so mask them before accumulating.
                x = x_ref[...]
                rows = jax.lax.broadcasted_iota(
                    jnp.int32, (x.shape[1], x.shape[2]), 0)              # (tT, tH)
                mask = (rows < t_valid_last)[None, :, :]                 # (1, tT, tH)
                accumulate(jnp.where(mask, x, jnp.zeros_like(x)))
        else:
            accumulate(x_ref[...])

    return kernel


def utterance_level_featurizer(embeds_ssl, weights, *, tile_t=None):
    """embeds_ssl: (1, L, T, H) any float dtype; weights: (L,) -> (H,) f32."""
    B, L, T, H = embeds_ssl.shape
    assert B == 1, "forward() squeezes batch then averages over time; requires B == 1"

    x = embeds_ssl[0]                               # (L, T, H), native dtype for DMA
    itemsize = jnp.dtype(x.dtype).itemsize
    sub = {1: 32, 2: 16, 4: 8}.get(itemsize, 8)     # dtype sublane packing multiple

    vmem_phys, num_cores = _tpu_vmem_and_cores()
    if vmem_phys >= 100 * 1024 * 1024:              # v5e / v6e class: 128 MiB VMEM/TC
        budget = 14 * 1024 * 1024                   # bytes per input DMA buffer
        hard_cap = 64 * 1024 * 1024                 # scoped vmem limit ceiling
    else:                                           # v7x class: 64 MiB VMEM/TC
        budget = 10 * 1024 * 1024
        hard_cap = 48 * 1024 * 1024

    # ---- lane (H) tile: prefer tH == H (fully contiguous DMA rows, no H padding).
    # Split only to give the 'parallel' axis >= 2 blocks on multi-TC chips, or when
    # a minimal (L, sub, H) tile would not fit the per-buffer budget — and only into
    # multiples of 128 dividing H exactly (no lane padding, no partial H blocks).
    full_fits = L * sub * H * itemsize <= budget
    want_split = (num_cores >= 2 and H >= 256) or not full_fits
    tH = H
    if want_split and H % 128 == 0:
        divisors = [d for d in range(128, H // 2 + 1, 128) if H % d == 0]
        if divisors:
            fitting = [d for d in divisors if L * sub * d * itemsize <= budget]
            tH = max(fitting) if fitting else min(divisors)

    # ---- time (T) tile: as large as the per-buffer budget allows, rounded to the
    # dtype's sublane packing, capped to keep VMEM sane on every generation.
    if tile_t is None:
        tT = (budget // max(1, L * tH * itemsize)) // sub * sub
        tT = max(sub, min(2048, tT))
    else:
        tT = max(sub, _round_up(tile_t, sub))
    if tT >= T:
        tT = T                      # single full-extent T block (exempt from 8-rule)

    nH = -(-H // tH)                # tH divides H whenever we split, so this == H//tH
    nT = -(-T // tT)
    t_valid_last = T - (nT - 1) * tT
    needs_mask = (nT > 1) and (t_valid_last != tT)

    # softmax over layers + fold the 1/T of the time-mean; tiny, computed host-side.
    nw = (jax.nn.softmax(weights.astype(jnp.float32), axis=-1) / T).reshape(L, 1)

    # vmem limit from the actual footprint (double-buffered input tile + padded
    # output block + weights) with headroom, capped per generation.
    tile_bytes = L * tT * tH * itemsize
    out_bytes = 2 * 8 * _round_up(tH, 128) * 4
    w_bytes = 2 * _round_up(L, 8) * 128 * 4
    need = 2 * tile_bytes + out_bytes + w_bytes
    vmem_limit = max(16 * 1024 * 1024, min(int(1.5 * need) + (2 << 20), hard_cap))

    kernel = _make_featurizer_kernel(t_valid_last, needs_mask)

    out = pl.pallas_call(
        kernel,
        out_shape=jax.ShapeDtypeStruct((1, H), jnp.float32),
        grid_spec=pltpu.PrefetchScalarGridSpec(
            num_scalar_prefetch=0,
            grid=(nH, nT),                                           # reduction axis last
            in_specs=[
                pl.BlockSpec((L, 1), lambda h, t: (0, 0)),           # tiny weight tile
                pl.BlockSpec((L, tT, tH), lambda h, t: (0, t, h)),   # streamed embeddings
            ],
            out_specs=pl.BlockSpec((1, tH), lambda h, t: (0, h)),    # resident over T
        ),
        compiler_params=pltpu.CompilerParams(
            dimension_semantics=("parallel", "arbitrary"),
            vmem_limit_bytes=vmem_limit,
        ),
        cost_estimate=pl.CostEstimate(
            flops=2 * L * T * H,
            transcendentals=0,
            bytes_accessed=L * T * H * itemsize + H * 4 + L * 4,
        ),
    )(nw, x)

    return out[0]                                    # (H,)


def _reference(embeds_ssl, weights):
    # pure-JAX mirror of the PyTorch forward for sanity checking
    L = weights.shape[0]
    x = jnp.transpose(embeds_ssl, (1, 0, 2, 3)).astype(jnp.float32)   # (L, B, T, H)
    origin_shape = x.shape[1:]
    x_flat = x.reshape(L, -1)
    nw = jax.nn.softmax(weights.astype(jnp.float32), axis=-1)
    ws = jnp.sum(nw[:, None] * x_flat, axis=0).reshape(origin_shape)  # (B, T, H)
    ws = jnp.squeeze(ws)                                              # (T, H) for B=1
    return jnp.mean(ws, axis=0)                                       # (H,)


if __name__ == "__main__":
    key = jax.random.PRNGKey(0)
    k_w, k_x1, k_x2, k_x3 = jax.random.split(key, 4)

    LAYER_NUM = 13
    # deterministic synthetic parameters (stand-in for weighted_sum_weights.pt)
    # TODO(synk): real module loads weights via torch.load; synthesized here instead.
    weights = jax.random.normal(k_w, (LAYER_NUM,), dtype=jnp.float32)

    # Case 1: small shape, single-tile path (no masking, tH == H, tT == T).
    T1, H1 = 8, 32
    x1 = jax.random.normal(k_x1, (1, LAYER_NUM, T1, H1), dtype=jnp.float32)
    out1 = utterance_level_featurizer(x1, weights)
    jax.block_until_ready(out1)
    ref1 = _reference(x1, weights)
    assert out1.shape == (H1,)
    assert jnp.allclose(out1, ref1, atol=1e-5, rtol=1e-5), "mismatch vs reference (case 1)"

    # Case 2: bf16 streamed natively, T not a multiple of tT (exercises the in-kernel
    # edge-block mask) and H not a multiple of 128 (full-H lane block, no padding).
    T2, H2 = 20, 160
    x2 = jax.random.normal(k_x2, (1, LAYER_NUM, T2, H2), dtype=jnp.float32)
    out2 = utterance_level_featurizer(x2.astype(jnp.bfloat16), weights, tile_t=8)
    jax.block_until_ready(out2)
    ref2 = _reference(x2.astype(jnp.bfloat16), weights)
    assert out2.shape == (H2,)
    assert jnp.allclose(out2, ref2, atol=2e-2, rtol=2e-2), "mismatch vs reference (case 2)"

    # Case 3: H multiple of 128 (may split the parallel lane axis on 2-TC chips)
    # plus a ragged T tail on the multi-step reduction path.
    T3, H3 = 50, 256
    x3 = jax.random.normal(k_x3, (1, LAYER_NUM, T3, H3), dtype=jnp.float32)
    out3 = utterance_level_featurizer(x3, weights, tile_t=16)
    jax.block_until_ready(out3)
    ref3 = _reference(x3, weights)
    assert out3.shape == (H3,)
    assert jnp.allclose(out3, ref3, atol=1e-5, rtol=1e-5), "mismatch vs reference (case 3)"

    print("KERNEL_OK")
</pallas_src>

<mosaic_0001>
module attributes {stable_mosaic.version = 11 : i64} {
  func.func @kernel(%arg0: i32, %arg1: i32, %arg2: memref<13x1xf32, #tpu.memory_space<vmem>>, %arg3: memref<13x8x32xf32, #tpu.memory_space<vmem>>, %arg4: memref<1x32xf32, #tpu.memory_space<vmem>>) attributes {dimension_semantics = [#tpu.dimension_semantics<parallel>, #tpu.dimension_semantics<arbitrary>], iteration_bounds = array<i64: 1, 1>, scalar_prefetch = 0 : i64, scratch_operands = 0 : i64, tpu.core_type = #tpu.core_type<tc>, window_params = [{pipeline_mode = #tpu.pipeline_mode<synchronous>, transform_indices = @transform_0, window_bounds = array<i64: 13, 1>}, {transform_indices = @transform_1, window_bounds = array<i64: 13, 8, 32>}, {transform_indices = @transform_2, window_bounds = array<i64: 1, 32>}]} {
    %c0_i32 = arith.constant 0 : i32
    %0 = arith.cmpi eq, %arg1, %c0_i32 : i32
    %1 = arith.extui %0 : i1 to i32
    %c0_i32_0 = arith.constant 0 : i32
    %2 = arith.cmpi ne, %1, %c0_i32_0 : i32
    scf.if %2 {
      %cst_10 = arith.constant 0.000000e+00 : f32
      %13 = vector.broadcast %cst_10 : f32 to vector<1x32xf32>
      %c0_11 = arith.constant 0 : index
      %c0_12 = arith.constant 0 : index
      %14 = vector.load %arg4[%c0_11, %c0_12] : memref<1x32xf32, #tpu.memory_space<vmem>>, vector<1x32xf32>
      tpu.vector_store %arg4[%c0_11, %c0_12], %13 {strides = array<i32>} : memref<1x32xf32, #tpu.memory_space<vmem>>, vector<1x32xf32>,
    } else {
    }
    %c0 = arith.constant 0 : index
    %c0_1 = arith.constant 0 : index
    %c0_2 = arith.constant 0 : index
    %3 = vector.load %arg3[%c0, %c0_1, %c0_2] : memref<13x8x32xf32, #tpu.memory_space<vmem>>, vector<13x8x32xf32>
    %cst = arith.constant dense<0.000000e+00> : vector<13x32xf32>
    %4 = vector.multi_reduction <add>, %3, %cst [1] : vector<13x8x32xf32> to vector<13x32xf32>
    %c0_3 = arith.constant 0 : index
    %c0_4 = arith.constant 0 : index
    %5 = vector.load %arg4[%c0_3, %c0_4] : memref<1x32xf32, #tpu.memory_space<vmem>>, vector<1x32xf32>
    %c0_5 = arith.constant 0 : index
    %c0_6 = arith.constant 0 : index
    %6 = vector.load %arg2[%c0_5, %c0_6] : memref<13x1xf32, #tpu.memory_space<vmem>>, vector<13x1xf32>
    %7 = vector.broadcast %6 : vector<13x1xf32> to vector<13x32xf32>
    %8 = arith.mulf %7, %4 : vector<13x32xf32>
    %cst_7 = arith.constant dense<0.000000e+00> : vector<32xf32>
    %9 = vector.multi_reduction <add>, %8, %cst_7 [0] : vector<13x32xf32> to vector<32xf32>
    %10 = vector.shape_cast %9 : vector<32xf32> to vector<1x32xf32>
    %11 = arith.addf %5, %10 : vector<1x32xf32>
    %c0_8 = arith.constant 0 : index
    %c0_9 = arith.constant 0 : index
    %12 = vector.load %arg4[%c0_8, %c0_9] : memref<1x32xf32, #tpu.memory_space<vmem>>, vector<1x32xf32>
    tpu.vector_store %arg4[%c0_8, %c0_9], %11 {strides = array<i32>} : memref<1x32xf32, #tpu.memory_space<vmem>>, vector<1x32xf32>,
    return
  }
  func.func @transform_0(%arg0: i32, %arg1: i32) -> (i32, i32) {
    %c0_i32 = arith.constant 0 : i32
    %c0_i32_0 = arith.constant 0 : i32
    %c0_i32_1 = arith.constant 0 : i32
    return %c0_i32, %c0_i32_0 : i32, i32
  }
  func.func @transform_1(%arg0: i32, %arg1: i32) -> (i32, i32, i32) {
    %c0_i32 = arith.constant 0 : i32
    %c0_i32_0 = arith.constant 0 : i32
    return %c0_i32, %arg1, %arg0 : i32, i32, i32
  }
  func.func @transform_2(%arg0: i32, %arg1: i32) -> (i32, i32) {
    %c0_i32 = arith.constant 0 : i32
    %c0_i32_0 = arith.constant 0 : i32
    return %c0_i32, %arg0 : i32, i32
  }
}

</mosaic_0001>

<bundles_post_ra>
// kernel: tpu_custom_call.1
= control target key start
LH: loop header
LB: loop body
LE: loop exit
PB: predicated region body
PF: predicated region fallthrough
CT: control target
= control target key end

     0   :  { %7 = vsyncpa [#allocation3], 0  ;;  %s343_s0 = inlined_call_operand.vmem [shape: f32[13,1], index: 0, kind: input, shape index: {}]   ;;  %s344_s1 = inlined_call_operand.hbm [shape: f32[13,8,32], index: 1, kind: input, shape index: {}]   ;;  %s345_s2 = inlined_call_operand.hbm [shape: f32[1,32], index: 2, kind: output, shape index: {}]  }
   0x1   :  { %8 = vsyncpa [#allocation4], 0  ;;  %s268_s9 = smov [#allocation2]   ;;  %s220_s13 = scalar_lea.hbm %s344_s1, 1664 }
   0x2   :  { %s16_s10 = sshll.u32 %s268_s9, 4  ;;  %p221_p0 = scmp.ne.s32.totalorder %s344_s1, %s220_s13  ;;  %s17_s10 = int_to_ptr.vmem [resolvable:$true] %s16_s10 }
   0x3   :  { %p224_p1 = scmp.lt.u32.totalorder %s220_s13, %s344_s1 }
   0x5   :  { %p226_p2 = pnand %p224_p1, %p221_p0 }
   0x7   :  { %229 = shalt.err (!%p226_p2)
}
   0x8   :  { %s230_s18 = scalar_lea.vmem %s17_s10, 1664  ;;  %p235_p4 = scmp.lt.s32.totalorder %s17_s10, %s17_s10 }
   0x9   :  { %p231_p3 = scmp.ne.s32.totalorder %s17_s10, %s230_s18  ;;  %p236_p5 = scmp.lt.s32.totalorder %s230_s18, %s230_s18 }
   0xb   :  { %p237_p6 = por %p236_p5, %p235_p4 }
   0xd   :  { %p238_p7 = pnand %p237_p6, %p231_p3 }
   0xf   :  { %241 = shalt.err (!%p238_p7)
}
  0x10   :  { %s269_s19 = smov 128   ;;  %s270_s20 = smov 8  }
  0x11   :  { %22 = dma.hbm_to_vmem [thread:$0]  %s344_s1, 1664, %s17_s10, [#allocation3], %s269_s19, %s269_s19, %s270_s20  }
  0x12   :  { %264 = dma.done.wait [#allocation3], 1664  }
  0x13   :  { %265 = vsyncadd [#allocation3], 4294965632  ;;  %v271_v0 = vmov 0   ;;  %v138_v1 = vld [vmem:[%s343_s0] sm:$0xff]  ;;  %v139_v2 = vld [vmem:[%s343_s0 + $0x8] sm:$0x1f] }
  0x14   :  { %219 = vset.pattern.permute.xlu0 %v271_v0  ;;  %vm30_vm0 = vcmask 253952   ;;  %v272_v3 = vmov 0.0   ;;  %vm45_vm1 = vcmask 261120   ;;  %v32_v4 = vld [vmem:[#allocation2] sm:$0xff]  ;;  %v33_v5 = vld [vmem:[#allocation2 + $0x8] sm:$0xff]  ;;  %v34_v6 = vld [vmem:[#allocation2 + $0x10] sm:$0xff] }
  0x15   :  { %142 = vperm.xlu0 %219, %v138_v1   ;;  %31 = vst.msk [vmem:[#allocation5] sm:$0x1] %vm30_vm0, %v272_v3  ;;  %v46_v7 = vsel %vm45_vm1, %v32_v4, 0.0  ;;  %v53_v8 = vsel %vm45_vm1, %v33_v5, 0.0  ;;  %v35_v9 = vld [vmem:[#allocation2 + $0x18] sm:$0xff]  ;;  %v60_v12 = vsel %vm45_vm1, %v34_v6, 0.0 }
  0x16   :  { %v47_v10 = vrot.slane %v46_v7, 4  ;;  %v54_v11 = vrot.slane %v53_v8, 4  ;;  %v36_v13 = vld [vmem:[#allocation2 + $0x20] sm:$0xff]  ;;  %v61_v14 = vrot.slane %v60_v12, 4  ;;  %v67_v15 = vsel %vm45_vm1, %v35_v9, 0.0  ;;  %v41_v19 = vld [vmem:[#allocation2 + $0x48] sm:$0xff] }
  0x17   :  { %v40_v18 = vld [vmem:[#allocation2 + $0x40] sm:$0xff]  ;;  %v37_v20 = vld [vmem:[#allocation2 + $0x28] sm:$0xff]  ;;  %v68_v21 = vrot.slane %v67_v15, 4  ;;  %v74_v22 = vsel %vm45_vm1, %v36_v13, 0.0  ;;  %v38_v23 = vld [vmem:[#allocation2 + $0x30] sm:$0xff]  ;;  %v109_v29 = vsel %vm45_vm1, %v41_v19, 0.0 }
  0x18   :  { %v48_v16 = vadd.f32 %v47_v10, %v46_v7  ;;  %v55_v17 = vadd.f32 %v54_v11, %v53_v8  ;;  %v62_v24 = vadd.f32 %v61_v14, %v60_v12  ;;  %v42_v27 = vld [vmem:[#allocation2 + $0x50] sm:$0xff]  ;;  %v102_v28 = vsel %vm45_vm1, %v40_v18, 0.0  ;;  %v43_v35 = vld [vmem:[#allocation2 + $0x58] sm:$0xff]  ;;  %v44_v46 = vld [vmem:[#allocation2 + $0x60] sm:$0xff]  ;;  %s273_s0 = smov [#allocation5]  }
  0x19   :  { %147 = vperm.xlu0 %219, %v139_v2   ;;  %v75_v30 = vrot.slane %v74_v22, 4  ;;  %v81_v31 = vsel %vm45_vm1, %v37_v20, 0.0  ;;  %v69_v32 = vadd.f32 %v68_v21, %v67_v15  ;;  %v88_v33 = vsel %vm45_vm1, %v38_v23, 0.0  ;;  %v39_v39 = vld [vmem:[#allocation2 + $0x38] sm:$0xff]  ;;  %s204_s1 = sshll.u32 %s273_s0, 4  ;;  %s205_s1 = int_to_ptr.vmem [resolvable:$true] %s204_s1 }
  0x1a   :  { %v49_v25 = vrot.slane %v48_v16, 2  ;;  %v56_v26 = vrot.slane %v55_v17, 2  ;;  %v63_v34 = vrot.slane %v62_v24, 2  ;;  %v103_v36 = vrot.slane %v102_v28, 4  ;;  %s242_s27 = scalar_lea.vmem %s205_s1, 16  ;;  %s246_s28 = scalar_lea.vmem %s205_s1, 32 }
  0x1b   :  { %v110_v37 = vrot.slane %v109_v29, 4  ;;  %v116_v38 = vsel %vm45_vm1, %v42_v27, 0.0  ;;  %v82_v42 = vrot.slane %v81_v31, 4  ;;  %v76_v43 = vadd.f32 %v75_v30, %v74_v22  ;;  %p243_p8 = scmp.ne.s32.totalorder %s205_s1, %s242_s27  ;;  %p247_p9 = scmp.lt.s32.totalorder %s205_s1, %s205_s1 }
  0x1c   :  { %v50_v40 = vadd.f32 %v49_v25, %v48_v16  ;;  %v57_v41 = vadd.f32 %v56_v26, %v55_v17  ;;  %v70_v44 = vrot.slane %v69_v32, 2  ;;  %v89_v45 = vrot.slane %v88_v33, 4  ;;  %p248_p10 = scmp.lt.s32.totalorder %s246_s28, %s242_s27 }
  0x1d   :  { %v117_v47 = vrot.slane %v116_v38, 4  ;;  %v123_v48 = vsel %vm45_vm1, %v43_v35, 0.0  ;;  %v64_v49 = vadd.f32 %v63_v34, %v62_v24  ;;  %v95_v50 = vsel %vm45_vm1, %v39_v39, 0.0 }
  0x1e   :  { %v104_v51 = vadd.f32 %v103_v36, %v102_v28  ;;  %v111_v52 = vadd.f32 %v110_v37, %v109_v29  ;;  %v51_v53 = vrot.slane %v50_v40, 1  ;;  %v58_v54 = vrot.slane %v57_v41, 1  ;;  %p249_p11 = por %p248_p10, %p247_p9 }
  0x1f   :  { %v83_v55 = vadd.f32 %v82_v42, %v81_v31  ;;  %v77_v56 = vrot.slane %v76_v43, 2  ;;  %v124_v57 = vrot.slane %v123_v48, 4  ;;  %v130_v58 = vsel %vm45_vm1, %v44_v46, 0.0 }
  0x20   :  { %v71_v59 = vadd.f32 %v70_v44, %v69_v32  ;;  %v96_v60 = vrot.slane %v95_v50, 4  ;;  %v118_v61 = vadd.f32 %v117_v47, %v116_v38  ;;  %v65_v62 = vrot.slane %v64_v49, 1  ;;  %p250_p12 = pnand %p249_p11, %p243_p8 }
  0x21   :  { %v90_v63 = vadd.f32 %v89_v45, %v88_v33  ;;  %v105_v0 = vrot.slane %v104_v51, 2  ;;  %v112_v1 = vrot.slane %v111_v52, 2  ;;  %v52_v2 = vadd.f32 %v51_v53, %v50_v40 }
  0x22   :  { %v59_v3 = vadd.f32 %v58_v54, %v57_v41  ;;  %v84_v4 = vrot.slane %v83_v55, 2  ;;  %v131_v5 = vrot.slane %v130_v58, 4  ;;  %vm163_vm2 = vcmask 1041409  }
  0x23   :  { %v78_v6 = vadd.f32 %v77_v56, %v76_v43  ;;  %v125_v7 = vadd.f32 %v124_v57, %v123_v48  ;;  %v72_v8 = vrot.slane %v71_v59, 1  ;;  %v97_v9 = vadd.f32 %v96_v60, %v95_v50 }
  0x24   :  { %v119_v10 = vrot.slane %v118_v61, 2  ;;  %v66_v11 = vadd.f32 %v65_v62, %v64_v49  ;;  %v91_v12 = vrot.slane %v90_v63, 2  ;;  %v106_v13 = vadd.f32 %v105_v0, %v104_v51 }
  0x25   :  { %v113_v14 = vadd.f32 %v112_v1, %v111_v52  ;;  %vm165_vm3 = vcmask 1042434   ;;  %v85_v15 = vadd.f32 %v84_v4, %v83_v55  ;;  %v164_v16 = vsel %vm163_vm2, %v59_v3, %v52_v2  ;;  %v137_v3 = vld [vmem:[#allocation5] sm:$0x1] }
  0x26   :  { %v132_v17 = vadd.f32 %v131_v5, %v130_v58  ;;  %v79_v18 = vrot.slane %v78_v6, 1  ;;  %v126_v19 = vrot.slane %v125_v7, 2  ;;  %vm167_vm4 = vcmask 1043459  }
  0x27   :  { %v73_v20 = vadd.f32 %v72_v8, %v71_v59  ;;  %v98_v21 = vrot.slane %v97_v9, 2  ;;  %v120_v22 = vadd.f32 %v119_v10, %v118_v61  ;;  %v92_v23 = vadd.f32 %v91_v12, %v90_v63 }
  0x28   :  { %v166_v24 = vsel %vm165_vm3, %v66_v11, %v164_v16  ;;  %v107_v25 = vrot.slane %v106_v13, 1  ;;  %v114_v26 = vrot.slane %v113_v14, 1  ;;  %v86_v27 = vrot.slane %v85_v15, 1 }
  0x29   :  { %v133_v28 = vrot.slane %v132_v17, 2  ;;  %v80_v29 = vadd.f32 %v79_v18, %v78_v6  ;;  %v127_v30 = vadd.f32 %v126_v19, %v125_v7  ;;  %vm169_vm5 = vcmask 1044484  }
  0x2a   :  { %v99_v31 = vadd.f32 %v98_v21, %v97_v9  ;;  %v168_v32 = vsel %vm167_vm4, %v73_v20, %v166_v24  ;;  %v121_v33 = vrot.slane %v120_v22, 1  ;;  %v93_v34 = vrot.slane %v92_v23, 1 }
  0x2b   :  { %v108_v35 = vadd.f32 %v107_v25, %v106_v13  ;;  %v115_v36 = vadd.f32 %v114_v26, %v113_v14  ;;  %v87_v37 = vadd.f32 %v86_v27, %v85_v15  ;;  %v134_v38 = vadd.f32 %v133_v28, %v132_v17 }
  0x2c   :  { %vm171_vm6 = vcmask 1045509   ;;  %v170_v39 = vsel %vm169_vm5, %v80_v29, %v168_v32  ;;  %v128_v40 = vrot.slane %v127_v30, 1  ;;  %v100_v41 = vrot.slane %v99_v31, 1 }
  0x2d   :  { %v122_v42 = vadd.f32 %v121_v33, %v120_v22  ;;  %v94_v43 = vadd.f32 %v93_v34, %v92_v23  ;;  %v177_v44 = vsel %vm163_vm2, %v115_v36, %v108_v35  ;;  %vm173_vm7 = vcmask 1046534  }
  0x2e   :  { %v172_v45 = vsel %vm171_vm6, %v87_v37, %v170_v39  ;;  %v135_v46 = vrot.slane %v134_v38, 1  ;;  %v129_v47 = vadd.f32 %v128_v40, %v127_v30  ;;  %v101_v48 = vadd.f32 %v100_v41, %v99_v31 }
  0x2f   :  { %v178_v49 = vsel %vm165_vm3, %v122_v42, %v177_v44  ;;  %vm175_vm8 = vcmask 1047559   ;;  %v174_v50 = vsel %vm173_vm7, %v94_v43, %v172_v45  ;;  %vm186_vm9 = vcmask 258048  }
  0x30   :  { %v136_v51 = vadd.f32 %v135_v46, %v134_v38  ;;  %v179_v52 = vsel %vm167_vm4, %v129_v47, %v178_v49  ;;  %v176_v54 = vsel %vm175_vm8, %v101_v48, %v174_v50 }
  0x32   :  { %v180_v55 = vsel %vm169_vm5, %v136_v51, %v179_v52 }
  0x94   :  { %v143_v53 = vpop.permute.xlu0 %142 }
  0x95   :  { %v183_v56 = vmul.f32 %v176_v54, %v143_v53 }
  0x97   :  { %v185_v59 = vsel %vm45_vm1, %v183_v56, 0.0 }
  0x98   :  { %v148_v57 = vpop.permute.xlu0 %147 }
  0x99   :  { %v184_v58 = vmul.f32 %v180_v55, %v148_v57 }
  0x9b   :  { %v187_v60 = vsel %vm186_vm9, %v184_v58, 0.0 }
  0x9c   :  { %v188_v61 = vadd.f32 %v187_v60, %v185_v59 }
  0x9e   :  { %v189_v62 = vrot.slane %v188_v61, 4 }
  0xa0   :  { %v190_v63 = vadd.f32 %v189_v62, %v188_v61 }
  0xa2   :  { %v191_v0 = vrot.slane %v190_v63, 2 }
  0xa4   :  { %v192_v1 = vadd.f32 %v191_v0, %v190_v63 }
  0xa6   :  { %v193_v2 = vrot.slane %v192_v1, 1 }
  0xa8   :  { %v194_v4 = vadd.f32 %v193_v2, %v192_v1 }
  0xaa   :  { %v195_v5 = vadd.f32 %v194_v4, %v137_v3 }
  0xac   :  { %197 = vst.msk [vmem:[#allocation5] sm:$0x1] %vm30_vm0, %v195_v5 }
  0xad   :  { %253 = shalt.err (!%p250_p12)
}
  0xae   :  { %s254_s3 = scalar_lea.hbm %s345_s2, 16 }
  0xaf   :  { %p255_p13 = scmp.ne.s32.totalorder %s345_s2, %s254_s3  ;;  %p258_p0 = scmp.lt.u32.totalorder %s254_s3, %s345_s2 }
  0xb1   :  { %p260_p1 = pnand %p258_p0, %p255_p13 }
  0xb3   :  { %263 = shalt.err (!%p260_p1)
}
  0xb4   :  { %207 = dma.vmem_to_hbm [thread:$0]  %s205_s1, 16, %s345_s2, [#allocation4]  }
  0xb5   :  { %266 = dma.done.wait [#allocation4], 16  }
  0xb6   :  { %267 = vsyncadd [#allocation4], 4294967280 }
  0xb7   :  { %211 = vsyncpa [#allocation3], 1 }
  0xb8   :  { %212 = vsyncpa [#allocation4], 1 }

</bundles_post_ra>
